<compile_context>
chip_gen: v7x
topology: tpu7x:2x2x1
jax: 0.10.0
libtpu: 0.0.40
codegen_flags: <defaults>
</compile_context>

<pallas_src>
import jax
import jax.numpy as jnp
from jax.experimental import pallas as pl
from jax.experimental.pallas import tpu as pltpu


def _round_up(n, m):
    return ((n + m - 1) // m) * m


def _pad_to(a, shape):
    return jnp.pad(a, [(0, t - s) for s, t in zip(a.shape, shape)])


def mlp_kernel(x_ref, w1_ref, b1_ref, w2_ref, b2_ref, o_ref, xz_ref):
    """fc1 -> ReLU -> fc2 on one batch tile.

    x_ref  : [tm, In]         unpadded activations
    w1_ref : [in_pad, h_pad]  zero-padded, VMEM-resident
    b1_ref : [1, h_pad]
    w2_ref : [h_pad, out_pad]
    b2_ref : [1, out_pad]
    o_ref  : [tm, Out]        logical-width output (masked store)
    xz_ref : [tm, in_pad]     VMEM scratch to zero-extend x's contraction dim
    """
    in_features = x_ref.shape[-1]
    out_features = o_ref.shape[-1]

    # Zero-extend x -> [tm, in_pad] so fc1 runs with a sublane-aligned K.
    # (Zeroing is required: stale VMEM could hold NaNs, and NaN * 0 != 0.)
    xz_ref[...] = jnp.zeros_like(xz_ref)
    xz_ref[:, :in_features] = x_ref[...]

    # fc1 + ReLU (MXU matmul, f32 accumulation).
    h = jnp.dot(xz_ref[...], w1_ref[...], preferred_element_type=jnp.float32)
    h = jnp.maximum(h + b1_ref[...], 0.0)

    # fc2 (lane-dense matmul); slice back to the logical output width in-kernel.
    y = jnp.dot(h, w2_ref[...], preferred_element_type=jnp.float32)
    y = y + b2_ref[...]
    o_ref[...] = y[:, :out_features].astype(o_ref.dtype)


def prepare_padded_params(w1, b1, w2, b2):
    """Pad weights/biases to vreg-friendly shapes ONCE (hoisted out of forward)."""
    in_features, hidden = w1.shape
    out_features = w2.shape[1]
    in_pad = _round_up(max(in_features, 8), 8)        # sublane-aligned K for fc1
    h_pad = _round_up(max(hidden, 128), 128)          # lane-dense hidden width
    out_pad = _round_up(max(out_features, 128), 128)  # lane-dense fc2 matmul width
    w1_p = _pad_to(w1, (in_pad, h_pad))
    b1_p = _pad_to(b1.reshape(1, hidden), (1, h_pad))
    w2_p = _pad_to(w2, (h_pad, out_pad))
    b2_p = _pad_to(b2.reshape(1, out_features), (1, out_pad))
    return (w1_p, b1_p, w2_p, b2_p), out_features


def simple_neural_net_forward(x, padded_params, out_features, *, max_batch_tile=512):
    """Forward pass. x: [B, In] (unpadded); padded_params from prepare_padded_params."""
    w1_p, b1_p, w2_p, b2_p = padded_params
    B, in_features = x.shape
    in_pad, h_pad = w1_p.shape
    out_pad = w2_p.shape[1]

    # Small batches -> one grid step on one TensorCore (no per-step overhead,
    # no cross-TC sharding of tiny work).  Large batches -> tile & shard.
    if B <= max_batch_tile:
        tm, b_pad = B, B
    else:
        tm = max_batch_tile
        b_pad = _round_up(B, tm)
        if b_pad != B:
            x = jnp.pad(x, ((0, b_pad - B), (0, 0)))
    n_steps = b_pad // tm
    dim_semantics = ("parallel",) if n_steps > 1 else ("arbitrary",)

    out = pl.pallas_call(
        mlp_kernel,
        out_shape=jax.ShapeDtypeStruct((b_pad, out_features), x.dtype),
        grid=(n_steps,),
        in_specs=[
            # Activations stream per batch tile (block dims == full dims are legal).
            pl.BlockSpec((tm, in_features), lambda i: (i, 0)),
            # Weights/biases: constant (0, 0) index -> DMA'd once, VMEM-resident.
            pl.BlockSpec((in_pad, h_pad), lambda i: (0, 0)),
            pl.BlockSpec((1, h_pad), lambda i: (0, 0)),
            pl.BlockSpec((h_pad, out_pad), lambda i: (0, 0)),
            pl.BlockSpec((1, out_pad), lambda i: (0, 0)),
        ],
        # Logical-width output block: no post-kernel slab slice needed.
        out_specs=pl.BlockSpec((tm, out_features), lambda i: (i, 0)),
        scratch_shapes=[pltpu.VMEM((tm, in_pad), jnp.float32)],
        compiler_params=pltpu.CompilerParams(
            dimension_semantics=dim_semantics,
            vmem_limit_bytes=32 * 1024 * 1024,  # well under v7x's 64 MiB/TC
        ),
    )(x, w1_p, b1_p, w2_p, b2_p)

    return out[:B] if b_pad != B else out


def init_params(key, input_size=2, hidden_size=10, output_size=1):
    """PyTorch nn.Linear default init: U(-1/sqrt(fan_in), 1/sqrt(fan_in)).
    Weights stored pre-transposed as [in_features, out_features]."""
    k1, k2, k3, k4 = jax.random.split(key, 4)
    bound1 = 1.0 / jnp.sqrt(jnp.float32(input_size))
    bound2 = 1.0 / jnp.sqrt(jnp.float32(hidden_size))
    w1 = jax.random.uniform(k1, (input_size, hidden_size), jnp.float32, -bound1, bound1)
    b1 = jax.random.uniform(k2, (1, hidden_size), jnp.float32, -bound1, bound1)
    w2 = jax.random.uniform(k3, (hidden_size, output_size), jnp.float32, -bound2, bound2)
    b2 = jax.random.uniform(k4, (1, output_size), jnp.float32, -bound2, bound2)
    return w1, b1, w2, b2


if __name__ == "__main__":
    key = jax.random.PRNGKey(0)
    k_x, k_p = jax.random.split(key)

    # Module sizes follow the PyTorch spec (In=2, H=10, Out=1); batch=256
    # amortizes launch overhead and still fits in a single grid step.
    batch, input_size, hidden_size, output_size = 256, 2, 10, 1
    x = jax.random.normal(k_x, (batch, input_size), dtype=jnp.float32)
    w1, b1, w2, b2 = init_params(k_p, input_size, hidden_size, output_size)

    # Static padding done once, outside the per-call path.
    padded_params, out_features = prepare_padded_params(w1, b1, w2, b2)

    out = simple_neural_net_forward(x, padded_params, out_features)
    out = jax.block_until_ready(out)

    # Reference check in plain JAX (same math, unpadded).
    ref = jnp.maximum(x @ w1 + b1, 0.0) @ w2 + b2
    assert out.shape == (batch, output_size)
    assert jnp.allclose(out, ref, atol=1e-5, rtol=1e-5)

    print("KERNEL_OK")
</pallas_src>

<mosaic_0001>
module attributes {stable_mosaic.version = 11 : i64} {
  func.func @mlp_kernel(%arg0: i32, %arg1: memref<256x2xf32, #tpu.memory_space<vmem>>, %arg2: memref<8x128xf32, #tpu.memory_space<vmem>>, %arg3: memref<1x128xf32, #tpu.memory_space<vmem>>, %arg4: memref<128x128xf32, #tpu.memory_space<vmem>>, %arg5: memref<1x128xf32, #tpu.memory_space<vmem>>, %arg6: memref<256x1xf32, #tpu.memory_space<vmem>>, %arg7: memref<256x8xf32, #tpu.memory_space<vmem>>) attributes {dimension_semantics = [#tpu.dimension_semantics<arbitrary>], iteration_bounds = array<i64: 1>, scalar_prefetch = 0 : i64, scratch_operands = 1 : i64, tpu.core_type = #tpu.core_type<tc>, window_params = [{transform_indices = @transform_0, window_bounds = array<i64: 256, 2>}, {pipeline_mode = #tpu.pipeline_mode<synchronous>, transform_indices = @transform_1, window_bounds = array<i64: 8, 128>}, {pipeline_mode = #tpu.pipeline_mode<synchronous>, transform_indices = @transform_2, window_bounds = array<i64: 1, 128>}, {pipeline_mode = #tpu.pipeline_mode<synchronous>, transform_indices = @transform_3, window_bounds = array<i64: 128, 128>}, {pipeline_mode = #tpu.pipeline_mode<synchronous>, transform_indices = @transform_4, window_bounds = array<i64: 1, 128>}, {transform_indices = @transform_5, window_bounds = array<i64: 256, 1>}]} {
    %cst = arith.constant 0.000000e+00 : f32
    %0 = vector.broadcast %cst : f32 to vector<256x8xf32>
    %c0 = arith.constant 0 : index
    %c0_0 = arith.constant 0 : index
    %1 = vector.load %arg7[%c0, %c0_0] : memref<256x8xf32, #tpu.memory_space<vmem>>, vector<256x8xf32>
    tpu.vector_store %arg7[%c0, %c0_0], %0 {strides = array<i32>} : memref<256x8xf32, #tpu.memory_space<vmem>>, vector<256x8xf32>,
    %c0_1 = arith.constant 0 : index
    %c0_2 = arith.constant 0 : index
    %2 = vector.load %arg1[%c0_1, %c0_2] : memref<256x2xf32, #tpu.memory_space<vmem>>, vector<256x2xf32>
    %c0_3 = arith.constant 0 : index
    %c0_4 = arith.constant 0 : index
    %3 = vector.load %arg7[%c0_3, %c0_4] : memref<256x8xf32, #tpu.memory_space<vmem>>, vector<256x2xf32>
    tpu.vector_store %arg7[%c0_3, %c0_4], %2 {strides = array<i32>} : memref<256x8xf32, #tpu.memory_space<vmem>>, vector<256x2xf32>,
    %c0_5 = arith.constant 0 : index
    %c0_6 = arith.constant 0 : index
    %4 = vector.load %arg7[%c0_5, %c0_6] : memref<256x8xf32, #tpu.memory_space<vmem>>, vector<256x8xf32>
    %c0_7 = arith.constant 0 : index
    %c0_8 = arith.constant 0 : index
    %5 = vector.load %arg2[%c0_7, %c0_8] : memref<8x128xf32, #tpu.memory_space<vmem>>, vector<8x128xf32>
    %cst_9 = arith.constant dense<0.000000e+00> : vector<256x128xf32>
    %6 = tpu.matmul %4, %5, %cst_9 {dimension_numbers = #tpu.dot_dimension_numbers<[1], [0], [0], [1], [0, 0, 1, 1], [], []>} : vector<256x8xf32>, vector<8x128xf32>, vector<256x128xf32> -> vector<256x128xf32>
    %c0_10 = arith.constant 0 : index
    %c0_11 = arith.constant 0 : index
    %7 = vector.load %arg3[%c0_10, %c0_11] : memref<1x128xf32, #tpu.memory_space<vmem>>, vector<1x128xf32>
    %8 = vector.broadcast %7 : vector<1x128xf32> to vector<256x128xf32>
    %9 = arith.addf %6, %8 : vector<256x128xf32>
    %cst_12 = arith.constant 0.000000e+00 : f32
    %10 = vector.broadcast %cst_12 : f32 to vector<256x128xf32>
    %11 = arith.maximumf %9, %10 : vector<256x128xf32>
    %c0_13 = arith.constant 0 : index
    %c0_14 = arith.constant 0 : index
    %12 = vector.load %arg4[%c0_13, %c0_14] : memref<128x128xf32, #tpu.memory_space<vmem>>, vector<128x128xf32>
    %cst_15 = arith.constant dense<0.000000e+00> : vector<256x128xf32>
    %13 = tpu.matmul %11, %12, %cst_15 {dimension_numbers = #tpu.dot_dimension_numbers<[1], [0], [0], [1], [0, 0, 1, 1], [], []>} : vector<256x128xf32>, vector<128x128xf32>, vector<256x128xf32> -> vector<256x128xf32>
    %c0_16 = arith.constant 0 : index
    %c0_17 = arith.constant 0 : index
    %14 = vector.load %arg5[%c0_16, %c0_17] : memref<1x128xf32, #tpu.memory_space<vmem>>, vector<1x128xf32>
    %15 = vector.broadcast %14 : vector<1x128xf32> to vector<256x128xf32>
    %16 = arith.addf %13, %15 : vector<256x128xf32>
    %17 = vector.extract_strided_slice %16 {offsets = [0, 0], sizes = [256, 1], strides = [1, 1]} : vector<256x128xf32> to vector<256x1xf32>
    %c0_18 = arith.constant 0 : index
    %c0_19 = arith.constant 0 : index
    %18 = vector.load %arg6[%c0_18, %c0_19] : memref<256x1xf32, #tpu.memory_space<vmem>>, vector<256x1xf32>
    tpu.vector_store %arg6[%c0_18, %c0_19], %17 {strides = array<i32>} : memref<256x1xf32, #tpu.memory_space<vmem>>, vector<256x1xf32>,
    return
  }
  func.func @transform_0(%arg0: i32) -> (i32, i32) {
    %c0_i32 = arith.constant 0 : i32
    %c0_i32_0 = arith.constant 0 : i32
    return %arg0, %c0_i32 : i32, i32
  }
  func.func @transform_1(%arg0: i32) -> (i32, i32) {
    %c0_i32 = arith.constant 0 : i32
    %c0_i32_0 = arith.constant 0 : i32
    %c0_i32_1 = arith.constant 0 : i32
    return %c0_i32, %c0_i32_0 : i32, i32
  }
  func.func @transform_2(%arg0: i32) -> (i32, i32) {
    %c0_i32 = arith.constant 0 : i32
    %c0_i32_0 = arith.constant 0 : i32
    %c0_i32_1 = arith.constant 0 : i32
    return %c0_i32, %c0_i32_0 : i32, i32
  }
  func.func @transform_3(%arg0: i32) -> (i32, i32) {
    %c0_i32 = arith.constant 0 : i32
    %c0_i32_0 = arith.constant 0 : i32
    %c0_i32_1 = arith.constant 0 : i32
    return %c0_i32, %c0_i32_0 : i32, i32
  }
  func.func @transform_4(%arg0: i32) -> (i32, i32) {
    %c0_i32 = arith.constant 0 : i32
    %c0_i32_0 = arith.constant 0 : i32
    %c0_i32_1 = arith.constant 0 : i32
    return %c0_i32, %c0_i32_0 : i32, i32
  }
  func.func @transform_5(%arg0: i32) -> (i32, i32) {
    %c0_i32 = arith.constant 0 : i32
    %c0_i32_0 = arith.constant 0 : i32
    return %arg0, %c0_i32 : i32, i32
  }
}

</mosaic_0001>

<bundles_post_ra>
// kernel: tpu_custom_call.1
= control target key start
LH: loop header
LB: loop body
LE: loop exit
PB: predicated region body
PF: predicated region fallthrough
CT: control target
= control target key end

     0   :  { %vm20_vm0 = vcmask 64512   ;;  %vm85_vm1 = vcmask 15360   ;;  %v1090_v1 = vmov 0.0   ;;  %vm759_vm2 = vcmask 7168   ;;  %s1566_s1 = inlined_call_operand.vmem [shape: f32[8,128], index: 1, kind: input, shape index: {}]   ;;  %s1567_s0 = inlined_call_operand.vmem [shape: f32[256,2], index: 0, kind: input, shape index: {}]   ;;  %s1568_s3 = inlined_call_operand.vmem [shape: f32[128,128], index: 3, kind: input, shape index: {}]   ;;  %s1569_s2 = inlined_call_operand.vmem [shape: f32[1,128], index: 2, kind: input, shape index: {}]   ;;  %s1570_s4 = inlined_call_operand.vmem [shape: f32[1,128], index: 4, kind: input, shape index: {}]   ;;  %s1571_s5 = inlined_call_operand.vmem [shape: f32[256,1], index: 5, kind: output, shape index: {}]  }
   0x1   :  { %v150_v0 = vld [vmem:[%s1566_s1] sm:$0xff]  ;;  %21 = vst.msk [vmem:[#allocation2] sm:$0xff] %vm20_vm0, %v1090_v1  ;;  %22 = vst.msk [vmem:[#allocation2 + $0x8] sm:$0xff] %vm20_vm0, %v1090_v1  ;;  %v54_v3 = vld [vmem:[%s1567_s0 + $0x8] sm:$0xff] }
   0x2   :  { %v53_v2 = vld [vmem:[%s1567_s0] sm:$0xff]  ;;  %23 = vst.msk [vmem:[#allocation2 + $0x10] sm:$0xff] %vm20_vm0, %v1090_v1  ;;  %24 = vst.msk [vmem:[#allocation2 + $0x18] sm:$0xff] %vm20_vm0, %v1090_v1  ;;  %911 = vmatprep.subr.mxu0 %v150_v0  ;;  %v55_v4 = vld [vmem:[%s1567_s0 + $0x10] sm:$0xff] }
   0x3   :  { %25 = vst.msk [vmem:[#allocation2 + $0x20] sm:$0xff] %vm20_vm0, %v1090_v1  ;;  %26 = vst.msk [vmem:[#allocation2 + $0x28] sm:$0xff] %vm20_vm0, %v1090_v1  ;;  %v56_v5 = vld [vmem:[%s1567_s0 + $0x18] sm:$0xff]  ;;  %v57_v6 = vld [vmem:[%s1567_s0 + $0x20] sm:$0xff]  ;;  %912 = vmatpush3.msra.mxu0 %v150_v0 }
   0x4   :  { %27 = vst.msk [vmem:[#allocation2 + $0x30] sm:$0xff] %vm20_vm0, %v1090_v1  ;;  %28 = vst.msk [vmem:[#allocation2 + $0x38] sm:$0xff] %vm20_vm0, %v1090_v1  ;;  %v58_v7 = vld [vmem:[%s1567_s0 + $0x28] sm:$0xff]  ;;  %v59_v8 = vld [vmem:[%s1567_s0 + $0x30] sm:$0xff] }
   0x5   :  { %29 = vst.msk [vmem:[#allocation2 + $0x40] sm:$0xff] %vm20_vm0, %v1090_v1  ;;  %30 = vst.msk [vmem:[#allocation2 + $0x48] sm:$0xff] %vm20_vm0, %v1090_v1  ;;  %v60_v9 = vld [vmem:[%s1567_s0 + $0x38] sm:$0xff]  ;;  %v61_v10 = vld [vmem:[%s1567_s0 + $0x40] sm:$0xff] }
   0x6   :  { %31 = vst.msk [vmem:[#allocation2 + $0x50] sm:$0xff] %vm20_vm0, %v1090_v1  ;;  %32 = vst.msk [vmem:[#allocation2 + $0x58] sm:$0xff] %vm20_vm0, %v1090_v1  ;;  %v62_v11 = vld [vmem:[%s1567_s0 + $0x48] sm:$0xff]  ;;  %v63_v12 = vld [vmem:[%s1567_s0 + $0x50] sm:$0xff] }
   0x7   :  { %33 = vst.msk [vmem:[#allocation2 + $0x60] sm:$0xff] %vm20_vm0, %v1090_v1  ;;  %34 = vst.msk [vmem:[#allocation2 + $0x68] sm:$0xff] %vm20_vm0, %v1090_v1  ;;  %v64_v13 = vld [vmem:[%s1567_s0 + $0x58] sm:$0xff]  ;;  %v65_v14 = vld [vmem:[%s1567_s0 + $0x60] sm:$0xff] }
   0x8   :  { %35 = vst.msk [vmem:[#allocation2 + $0x70] sm:$0xff] %vm20_vm0, %v1090_v1  ;;  %36 = vst.msk [vmem:[#allocation2 + $0x78] sm:$0xff] %vm20_vm0, %v1090_v1  ;;  %v66_v15 = vld [vmem:[%s1567_s0 + $0x68] sm:$0xff]  ;;  %v67_v16 = vld [vmem:[%s1567_s0 + $0x70] sm:$0xff] }
   0x9   :  { %37 = vst.msk [vmem:[#allocation2 + $0x80] sm:$0xff] %vm20_vm0, %v1090_v1  ;;  %38 = vst.msk [vmem:[#allocation2 + $0x88] sm:$0xff] %vm20_vm0, %v1090_v1  ;;  %v68_v17 = vld [vmem:[%s1567_s0 + $0x78] sm:$0xff]  ;;  %v69_v18 = vld [vmem:[%s1567_s0 + $0x80] sm:$0xff] }
   0xa   :  { %39 = vst.msk [vmem:[#allocation2 + $0x90] sm:$0xff] %vm20_vm0, %v1090_v1  ;;  %40 = vst.msk [vmem:[#allocation2 + $0x98] sm:$0xff] %vm20_vm0, %v1090_v1  ;;  %v70_v19 = vld [vmem:[%s1567_s0 + $0x88] sm:$0xff]  ;;  %v71_v20 = vld [vmem:[%s1567_s0 + $0x90] sm:$0xff] }
   0xb   :  { %41 = vst.msk [vmem:[#allocation2 + $0xa0] sm:$0xff] %vm20_vm0, %v1090_v1  ;;  %42 = vst.msk [vmem:[#allocation2 + $0xa8] sm:$0xff] %vm20_vm0, %v1090_v1  ;;  %v72_v21 = vld [vmem:[%s1567_s0 + $0x98] sm:$0xff]  ;;  %v73_v22 = vld [vmem:[%s1567_s0 + $0xa0] sm:$0xff] }
   0xc   :  { %43 = vst.msk [vmem:[#allocation2 + $0xb0] sm:$0xff] %vm20_vm0, %v1090_v1  ;;  %44 = vst.msk [vmem:[#allocation2 + $0xb8] sm:$0xff] %vm20_vm0, %v1090_v1  ;;  %v74_v23 = vld [vmem:[%s1567_s0 + $0xa8] sm:$0xff]  ;;  %v75_v24 = vld [vmem:[%s1567_s0 + $0xb0] sm:$0xff] }
   0xd   :  { %45 = vst.msk [vmem:[#allocation2 + $0xc0] sm:$0xff] %vm20_vm0, %v1090_v1  ;;  %46 = vst.msk [vmem:[#allocation2 + $0xc8] sm:$0xff] %vm20_vm0, %v1090_v1  ;;  %v76_v27 = vld [vmem:[%s1567_s0 + $0xb8] sm:$0xff]  ;;  %v77_v33 = vld [vmem:[%s1567_s0 + $0xc0] sm:$0xff] }
   0xe   :  { %47 = vst.msk [vmem:[#allocation2 + $0xd0] sm:$0xff] %vm20_vm0, %v1090_v1  ;;  %48 = vst.msk [vmem:[#allocation2 + $0xd8] sm:$0xff] %vm20_vm0, %v1090_v1  ;;  %v78_v34 = vld [vmem:[%s1567_s0 + $0xc8] sm:$0xff]  ;;  %v79_v36 = vld [vmem:[%s1567_s0 + $0xd0] sm:$0xff] }
   0xf   :  { %49 = vst.msk [vmem:[#allocation2 + $0xe0] sm:$0xff] %vm20_vm0, %v1090_v1  ;;  %50 = vst.msk [vmem:[#allocation2 + $0xe8] sm:$0xff] %vm20_vm0, %v1090_v1  ;;  %v80_v37 = vld [vmem:[%s1567_s0 + $0xd8] sm:$0xff]  ;;  %v81_v38 = vld [vmem:[%s1567_s0 + $0xe0] sm:$0xff] }
  0x10   :  { %51 = vst.msk [vmem:[#allocation2 + $0xf0] sm:$0xff] %vm20_vm0, %v1090_v1  ;;  %52 = vst.msk [vmem:[#allocation2 + $0xf8] sm:$0xff] %vm20_vm0, %v1090_v1  ;;  %v82_v39 = vld [vmem:[%s1567_s0 + $0xe8] sm:$0xff]  ;;  %v83_v40 = vld [vmem:[%s1567_s0 + $0xf0] sm:$0xff] }
  0x11   :  { %86 = vst.msk [vmem:[#allocation2] sm:$0xff] %vm85_vm1, %v53_v2  ;;  %87 = vst.msk [vmem:[#allocation2 + $0x8] sm:$0xff] %vm85_vm1, %v54_v3  ;;  %v84_v41 = vld [vmem:[%s1567_s0 + $0xf8] sm:$0xff]  ;;  %v511_v42 = vld [vmem:[%s1568_s3] sm:$0xff] }
  0x12   :  { %88 = vst.msk [vmem:[#allocation2 + $0x10] sm:$0xff] %vm85_vm1, %v55_v4  ;;  %89 = vst.msk [vmem:[#allocation2 + $0x18] sm:$0xff] %vm85_vm1, %v56_v5  ;;  %v512_v43 = vld [vmem:[%s1568_s3 + $0x8] sm:$0xff]  ;;  %v513_v44 = vld [vmem:[%s1568_s3 + $0x10] sm:$0xff] }
  0x13   :  { %90 = vst.msk [vmem:[#allocation2 + $0x20] sm:$0xff] %vm85_vm1, %v57_v6  ;;  %91 = vst.msk [vmem:[#allocation2 + $0x28] sm:$0xff] %vm85_vm1, %v58_v7  ;;  %v1041_v46 = vpack.c.bf16 %v512_v43, %v511_v42  ;;  %v514_v47 = vld [vmem:[%s1568_s3 + $0x18] sm:$0xff]  ;;  %v515_v49 = vld [vmem:[%s1568_s3 + $0x20] sm:$0xff] }
  0x14   :  { %92 = vst.msk [vmem:[#allocation2 + $0x30] sm:$0xff] %vm85_vm1, %v59_v8  ;;  %93 = vst.msk [vmem:[#allocation2 + $0x38] sm:$0xff] %vm85_vm1, %v60_v9  ;;  %v1045_v48 = vpack.c.bf16 %v514_v47, %v513_v44  ;;  %v516_v50 = vld [vmem:[%s1568_s3 + $0x28] sm:$0xff]  ;;  %v517_v54 = vld [vmem:[%s1568_s3 + $0x30] sm:$0xff] }
  0x15   :  { %94 = vst.msk [vmem:[#allocation2 + $0x40] sm:$0xff] %vm85_vm1, %v61_v10  ;;  %95 = vst.msk [vmem:[#allocation2 + $0x48] sm:$0xff] %vm85_vm1, %v62_v11  ;;  %1042 = vmatprep.subr.bf16.mxu0 %v1041_v46  ;;  %v1049_v53 = vpack.c.bf16 %v516_v50, %v515_v49  ;;  %1073 = vmatprep.subr.bf16.mxu1 %v1041_v46  ;;  %v518_v55 = vld [vmem:[%s1568_s3 + $0x38] sm:$0xff]  ;;  %v519_v59 = vld [vmem:[%s1568_s3 + $0x40] sm:$0xff] }
  0x16   :  { %96 = vst.msk [vmem:[#allocation2 + $0x50] sm:$0xff] %vm85_vm1, %v63_v12  ;;  %97 = vst.msk [vmem:[#allocation2 + $0x58] sm:$0xff] %vm85_vm1, %v64_v13  ;;  %1081 = vmatpush3.bf16.msra.mxu1 %v1041_v46  ;;  %v1053_v58 = vpack.c.bf16 %v518_v55, %v517_v54  ;;  %v520_v60 = vld [vmem:[%s1568_s3 + $0x48] sm:$0xff]  ;;  %v521_v0 = vld [vmem:[%s1568_s3 + $0x50] sm:$0xff] }
  0x17   :  { %98 = vst.msk [vmem:[#allocation2 + $0x60] sm:$0xff] %vm85_vm1, %v65_v14  ;;  %99 = vst.msk [vmem:[#allocation2 + $0x68] sm:$0xff] %vm85_vm1, %v66_v15  ;;  %1074 = vmatprep.subr.bf16.mxu1 %v1045_v48  ;;  %v1057_v63 = vpack.c.bf16 %v520_v60, %v519_v59  ;;  %v522_v1 = vld [vmem:[%s1568_s3 + $0x58] sm:$0xff]  ;;  %v523_v5 = vld [vmem:[%s1568_s3 + $0x60] sm:$0xff] }
  0x18   :  { %100 = vst.msk [vmem:[#allocation2 + $0x70] sm:$0xff] %vm85_vm1, %v67_v16  ;;  %101 = vst.msk [vmem:[#allocation2 + $0x78] sm:$0xff] %vm85_vm1, %v68_v17  ;;  %v118_v25 = vld [vmem:[#allocation2] sm:$0xff]  ;;  %v119_v26 = vld [vmem:[#allocation2 + $0x8] sm:$0xff]  ;;  %v1061_v4 = vpack.c.bf16 %v522_v1, %v521_v0 }
  0x19   :  { %102 = vst.msk [vmem:[#allocation2 + $0x80] sm:$0xff] %vm85_vm1, %v69_v18  ;;  %103 = vst.msk [vmem:[#allocation2 + $0x88] sm:$0xff] %vm85_vm1, %v70_v19  ;;  %913 = vmatprep.mubr.msk.f32.mxu0 %vm20_vm0, %v118_v25  ;;  %v120_v28 = vld [vmem:[#allocation2 + $0x10] sm:$0xff]  ;;  %v121_v29 = vld [vmem:[#allocation2 + $0x18] sm:$0xff] }
  0x1a   :  { %104 = vst.msk [vmem:[#allocation2 + $0x90] sm:$0xff] %vm85_vm1, %v71_v20  ;;  %105 = vst.msk [vmem:[#allocation2 + $0x98] sm:$0xff] %vm85_vm1, %v72_v21  ;;  %914 = vmatmul.mubr.msk.f32.vlgmr.msra.gmra.mrb[0].mxu0 %vm20_vm0, %v119_v26  ;;  %v122_v30 = vld [vmem:[#allocation2 + $0x20] sm:$0xff]  ;;  %v123_v31 = vld [vmem:[#allocation2 + $0x28] sm:$0xff]  ;;  %1082 = vmatpush3.bf16.msra.mxu1 %v1045_v48 }
  0x1b   :  { %106 = vst.msk [vmem:[#allocation2 + $0xa0] sm:$0xff] %vm85_vm1, %v73_v22  ;;  %107 = vst.msk [vmem:[#allocation2 + $0xa8] sm:$0xff] %vm85_vm1, %v74_v23  ;;  %916 = vmatprep.mubr.msk.f32.mxu0 %vm20_vm0, %v120_v28  ;;  %v124_v32 = vld [vmem:[#allocation2 + $0x30] sm:$0xff]  ;;  %v125_v35 = vld [vmem:[#allocation2 + $0x38] sm:$0xff]  ;;  %1044 = vmatpush3.bf16.msra.mxu0 %v1041_v46 }
  0x1c   :  { %108 = vst.msk [vmem:[#allocation2 + $0xb0] sm:$0xff] %vm85_vm1, %v75_v24  ;;  %109 = vst.msk [vmem:[#allocation2 + $0xb8] sm:$0xff] %vm85_vm1, %v76_v27  ;;  %v126_v45 = vld [vmem:[#allocation2 + $0x40] sm:$0xff]  ;;  %v127_v51 = vld [vmem:[#allocation2 + $0x48] sm:$0xff]  ;;  %1046 = vmatprep.subr.bf16.mxu0 %v1045_v48  ;;  %1075 = vmatprep.subr.bf16.mxu1 %v1049_v53 }
  0x1d   :  { %110 = vst.msk [vmem:[#allocation2 + $0xc0] sm:$0xff] %vm85_vm1, %v77_v33  ;;  %111 = vst.msk [vmem:[#allocation2 + $0xc8] sm:$0xff] %vm85_vm1, %v78_v34  ;;  %v128_v52 = vld [vmem:[#allocation2 + $0x50] sm:$0xff]  ;;  %v129_v56 = vld [vmem:[#allocation2 + $0x58] sm:$0xff] }
  0x1e   :  { %917 = vmatmul.mubr.msk.f32.gmra.mrb[2].mxu0 %vm20_vm0, %v121_v29  ;;  %112 = vst.msk [vmem:[#allocation2 + $0xd0] sm:$0xff] %vm85_vm1, %v79_v36  ;;  %113 = vst.msk [vmem:[#allocation2 + $0xd8] sm:$0xff] %vm85_vm1, %v80_v37  ;;  %v130_v57 = vld [vmem:[#allocation2 + $0x60] sm:$0xff]  ;;  %v131_v61 = vld [vmem:[#allocation2 + $0x68] sm:$0xff]  ;;  %1083 = vmatpush3.bf16.msra.mxu1 %v1049_v53 }
  0x1f   :  { %919 = vmatprep.mubr.msk.f32.mxu0 %vm20_vm0, %v122_v30  ;;  %114 = vst.msk [vmem:[#allocation2 + $0xe0] sm:$0xff] %vm85_vm1, %v81_v38  ;;  %115 = vst.msk [vmem:[#allocation2 + $0xe8] sm:$0xff] %vm85_vm1, %v82_v39  ;;  %1048 = vmatpush3.bf16.msra.mxu0 %v1045_v48  ;;  %v132_v62 = vld [vmem:[#allocation2 + $0x70] sm:$0xff]  ;;  %v133_v2 = vld [vmem:[#allocation2 + $0x78] sm:$0xff] }
  0x20   :  { %116 = vst.msk [vmem:[#allocation2 + $0xf0] sm:$0xff] %vm85_vm1, %v83_v40  ;;  %117 = vst.msk [vmem:[#allocation2 + $0xf8] sm:$0xff] %vm85_vm1, %v84_v41  ;;  %1050 = vmatprep.subr.bf16.mxu0 %v1049_v53  ;;  %1076 = vmatprep.subr.bf16.mxu1 %v1053_v58  ;;  %v134_v3 = vld [vmem:[#allocation2 + $0x80] sm:$0xff]  ;;  %v524_v6 = vld [vmem:[%s1568_s3 + $0x68] sm:$0xff] }
  0x21   :  { %v135_v7 = vld [vmem:[#allocation2 + $0x88] sm:$0xff]  ;;  %v136_v8 = vld [vmem:[#allocation2 + $0x90] sm:$0xff]  ;;  %v1065_v9 = vpack.c.bf16 %v524_v6, %v523_v5  ;;  %v137_v10 = vld [vmem:[#allocation2 + $0x98] sm:$0xff] }
  0x22   :  { %920 = vmatmul.mubr.msk.f32.gmra.mrb[4].mxu0 %vm20_vm0, %v123_v31  ;;  %1084 = vmatpush3.bf16.msra.mxu1 %v1053_v58  ;;  %v138_v11 = vld [vmem:[#allocation2 + $0xa0] sm:$0xff]  ;;  %v139_v12 = vld [vmem:[#allocation2 + $0xa8] sm:$0xff]  ;;  %v525_v23 = vld [vmem:[%s1568_s3 + $0x70] sm:$0xff] }
  0x23   :  { %922 = vmatprep.mubr.msk.f32.mxu0 %vm20_vm0, %v124_v32  ;;  %1052 = vmatpush3.bf16.msra.mxu0 %v1049_v53  ;;  %v140_v13 = vld [vmem:[#allocation2 + $0xb0] sm:$0xff]  ;;  %v141_v14 = vld [vmem:[#allocation2 + $0xb8] sm:$0xff]  ;;  %v1367_v26 = vld [vmem:[%s1569_s2] ss:$0 sm:$0xff] }
  0x24   :  { %1054 = vmatprep.subr.bf16.mxu0 %v1053_v58  ;;  %1077 = vmatprep.subr.bf16.mxu1 %v1057_v63  ;;  %v142_v15 = vld [vmem:[#allocation2 + $0xc0] sm:$0xff]  ;;  %v143_v16 = vld [vmem:[#allocation2 + $0xc8] sm:$0xff]  ;;  %v526_v24 = vld [vmem:[%s1568_s3 + $0x78] sm:$0xff] }
  0x25   :  { %v144_v17 = vld [vmem:[#allocation2 + $0xd0] sm:$0xff]  ;;  %v145_v18 = vld [vmem:[#allocation2 + $0xd8] sm:$0xff]  ;;  %v1069_v25 = vpack.c.bf16 %v526_v24, %v525_v23 }
  0x26   :  { %923 = vmatmul.mubr.msk.f32.gmra.mrb[6].mxu0 %vm20_vm0, %v125_v35  ;;  %1085 = vmatpush3.bf16.msra.mxu1 %v1057_v63  ;;  %v146_v19 = vld [vmem:[#allocation2 + $0xe0] sm:$0xff]  ;;  %v147_v20 = vld [vmem:[#allocation2 + $0xe8] sm:$0xff] }
  0x27   :  { %925 = vmatprep.mubr.msk.f32.mxu0 %vm20_vm0, %v126_v45  ;;  %1056 = vmatpush3.bf16.msra.mxu0 %v1053_v58  ;;  %v148_v21 = vld [vmem:[#allocation2 + $0xf0] sm:$0xff]  ;;  %v149_v22 = vld [vmem:[#allocation2 + $0xf8] sm:$0xff] }
  0x28   :  { %1058 = vmatprep.subr.bf16.mxu0 %v1057_v63  ;;  %1078 = vmatprep.subr.bf16.mxu1 %v1061_v4 }
  0x2a   :  { %926 = vmatmul.mubr.msk.f32.gmra.mrb[8].mxu0 %vm20_vm0, %v127_v51  ;;  %1086 = vmatpush3.bf16.msra.mxu1 %v1061_v4 }
  0x2b   :  { %928 = vmatprep.mubr.msk.f32.mxu0 %vm20_vm0, %v128_v52  ;;  %1060 = vmatpush3.bf16.msra.mxu0 %v1057_v63 }
  0x2c   :  { %1062 = vmatprep.subr.bf16.mxu0 %v1061_v4  ;;  %1079 = vmatprep.subr.bf16.mxu1 %v1065_v9 }
  0x2e   :  { %929 = vmatmul.mubr.msk.f32.gmra.mrb[10].mxu0 %vm20_vm0, %v129_v56  ;;  %1087 = vmatpush3.bf16.msra.mxu1 %v1065_v9 }
  0x2f   :  { %931 = vmatprep.mubr.msk.f32.mxu0 %vm20_vm0, %v130_v57  ;;  %1064 = vmatpush3.bf16.msra.mxu0 %v1061_v4 }
  0x30   :  { %1066 = vmatprep.subr.bf16.mxu0 %v1065_v9  ;;  %1080 = vmatprep.subr.bf16.mxu1 %v1069_v25 }
  0x32   :  { %932 = vmatmul.mubr.msk.f32.gmra.mrb[12].mxu0 %vm20_vm0, %v131_v61  ;;  %1088 = vmatpush3.bf16.msra.mxu1 %v1069_v25 }
  0x33   :  { %934 = vmatprep.mubr.msk.f32.mxu0 %vm20_vm0, %v132_v62  ;;  %1068 = vmatpush3.bf16.msra.mxu0 %v1065_v9 }
  0x34   :  { %1070 = vmatprep.subr.bf16.mxu0 %v1069_v25 }
  0x36   :  { %935 = vmatmul.mubr.msk.f32.gmra.mrb[14].mxu0 %vm20_vm0, %v133_v2 }
  0x37   :  { %937 = vmatprep.mubr.msk.f32.mxu0 %vm20_vm0, %v134_v3  ;;  %1072 = vmatpush3.bf16.msra.mxu0 %v1069_v25 }
  0x3a   :  { %938 = vmatmul.mubr.msk.f32.gmra.mrb[16].mxu0 %vm20_vm0, %v135_v7 }
  0x3b   :  { %940 = vmatprep.mubr.msk.f32.mxu0 %vm20_vm0, %v136_v8 }
  0x3e   :  { %941 = vmatmul.mubr.msk.f32.gmra.mrb[18].mxu0 %vm20_vm0, %v137_v10 }
  0x3f   :  { %943 = vmatprep.mubr.msk.f32.mxu0 %vm20_vm0, %v138_v11 }
  0x42   :  { %944 = vmatmul.mubr.msk.f32.gmra.mrb[20].mxu0 %vm20_vm0, %v139_v12 }
  0x43   :  { %946 = vmatprep.mubr.msk.f32.mxu0 %vm20_vm0, %v140_v13 }
  0x46   :  { %947 = vmatmul.mubr.msk.f32.gmra.mrb[22].mxu0 %vm20_vm0, %v141_v14 }
  0x47   :  { %949 = vmatprep.mubr.msk.f32.mxu0 %vm20_vm0, %v142_v15 }
  0x4a   :  { %950 = vmatmul.mubr.msk.f32.gmra.mrb[24].mxu0 %vm20_vm0, %v143_v16 }
  0x4b   :  { %952 = vmatprep.mubr.msk.f32.mxu0 %vm20_vm0, %v144_v17 }
  0x4e   :  { %953 = vmatmul.mubr.msk.f32.gmra.mrb[26].mxu0 %vm20_vm0, %v145_v18 }
  0x4f   :  { %955 = vmatprep.mubr.msk.f32.mxu0 %vm20_vm0, %v146_v19 }
  0x52   :  { %956 = vmatmul.mubr.msk.f32.gmra.mrb[28].mxu0 %vm20_vm0, %v147_v20 }
  0x53   :  { %958 = vmatprep.mubr.msk.f32.mxu0 %vm20_vm0, %v148_v21 }
  0x56   :  { %959 = vmatmul.mubr.msk.f32.gmra.mrb[30].mxu0 %vm20_vm0, %v149_v22 }
  0xed   :  { %v915_v27 = vpop.f32.mrb[0].mxu0 }
  0xee   :  { %v326_v28 = vadd.f32 %v915_v27, %v1367_v26  ;;  %v320_v29 = vpop.f32.mrb[1].mxu0 }
  0xef   :  { %v321_v30 = vadd.f32 %v1367_v26, %v320_v29 }
  0xf0   :  { %v480_v33 = vmax.f32 %v326_v28, 0.0 }
  0xf1   :  { %v479_v31 = vmax.f32 %v321_v30, 0.0  ;;  %v918_v32 = vpop.f32.mrb[2].mxu0 }
  0xf2   :  { %v336_v34 = vadd.f32 %v918_v32, %v1367_v26  ;;  %v330_v35 = vpop.f32.mrb[3].mxu0 }
  0xf3   :  { %v331_v36 = vadd.f32 %v1367_v26, %v330_v35  ;;  %993 = vmatprep.mubr.f32.mxu0 %v479_v31 }
  0xf4   :  { %994 = vmatmul.mubr.f32.vlgmr.msra.gmra.mrb[32].mxu0 %v480_v33  ;;  %v482_v39 = vmax.f32 %v336_v34, 0.0 }
  0xf5   :  { %v481_v37 = vmax.f32 %v331_v36, 0.0  ;;  %v921_v38 = vpop.f32.mrb[4].mxu0 }
  0xf6   :  { %v346_v40 = vadd.f32 %v921_v38, %v1367_v26  ;;  %v340_v41 = vpop.f32.mrb[5].mxu0 }
  0xf7   :  { %v341_v42 = vadd.f32 %v1367_v26, %v340_v41  ;;  %996 = vmatprep.mubr.f32.mxu0 %v481_v37 }
  0xf8   :  { %997 = vmatmul.mubr.f32.gmra.mrb[34].mxu0 %v482_v39  ;;  %v484_v45 = vmax.f32 %v346_v40, 0.0 }
  0xf9   :  { %v483_v43 = vmax.f32 %v341_v42, 0.0  ;;  %v924_v44 = vpop.f32.mrb[6].mxu0 }
  0xfa   :  { %v356_v46 = vadd.f32 %v924_v44, %v1367_v26  ;;  %v350_v47 = vpop.f32.mrb[7].mxu0 }
  0xfb   :  { %999 = vmatprep.mubr.f32.mxu0 %v483_v43  ;;  %v351_v48 = vadd.f32 %v1367_v26, %v350_v47 }
  0xfc   :  { %1000 = vmatmul.mubr.f32.gmra.mrb[36].mxu0 %v484_v45  ;;  %v486_v51 = vmax.f32 %v356_v46, 0.0 }
  0xfd   :  { %v927_v49 = vpop.f32.mrb[8].mxu0  ;;  %v485_v50 = vmax.f32 %v351_v48, 0.0 }
  0xfe   :  { %v366_v52 = vadd.f32 %v927_v49, %v1367_v26  ;;  %v360_v53 = vpop.f32.mrb[9].mxu0 }
  0xff   :  { %v361_v54 = vadd.f32 %v1367_v26, %v360_v53  ;;  %1002 = vmatprep.mubr.f32.mxu1 %v485_v50 }
 0x100   :  { %1003 = vmatmul.mubr.f32.vlgmr.msra.gmra.mrb[0].mxu1 %v486_v51  ;;  %v488_v57 = vmax.f32 %v366_v52, 0.0 }
 0x101   :  { %v487_v55 = vmax.f32 %v361_v54, 0.0  ;;  %v930_v56 = vpop.f32.mrb[10].mxu0 }
 0x102   :  { %v376_v58 = vadd.f32 %v930_v56, %v1367_v26  ;;  %v370_v59 = vpop.f32.mrb[11].mxu0 }
 0x103   :  { %v371_v60 = vadd.f32 %v1367_v26, %v370_v59  ;;  %1005 = vmatprep.mubr.f32.mxu1 %v487_v55 }
 0x104   :  { %1006 = vmatmul.mubr.f32.gmra.mrb[2].mxu1 %v488_v57  ;;  %v490_v63 = vmax.f32 %v376_v58, 0.0 }
 0x105   :  { %v489_v61 = vmax.f32 %v371_v60, 0.0  ;;  %v933_v62 = vpop.f32.mrb[12].mxu0  ;;  %v1404_v60 = vld [vmem:[%s1570_s4] ss:$0 sm:$0xff] }
 0x106   :  { %v386_v0 = vadd.f32 %v933_v62, %v1367_v26  ;;  %v380_v1 = vpop.f32.mrb[13].mxu0 }
 0x107   :  { %v381_v2 = vadd.f32 %v1367_v26, %v380_v1  ;;  %1008 = vmatprep.mubr.f32.mxu1 %v489_v61 }
 0x108   :  { %1009 = vmatmul.mubr.f32.gmra.mrb[4].mxu1 %v490_v63  ;;  %v492_v5 = vmax.f32 %v386_v0, 0.0 }
 0x109   :  { %v491_v3 = vmax.f32 %v381_v2, 0.0  ;;  %v936_v4 = vpop.f32.mrb[14].mxu0 }
 0x10a   :  { %v396_v6 = vadd.f32 %v936_v4, %v1367_v26  ;;  %v390_v7 = vpop.f32.mrb[15].mxu0 }
 0x10b   :  { %v391_v8 = vadd.f32 %v1367_v26, %v390_v7  ;;  %1011 = vmatprep.mubr.f32.mxu1 %v491_v3 }
 0x10c   :  { %1012 = vmatmul.mubr.f32.gmra.mrb[6].mxu1 %v492_v5  ;;  %v494_v11 = vmax.f32 %v396_v6, 0.0 }
 0x10d   :  { %v493_v9 = vmax.f32 %v391_v8, 0.0  ;;  %v939_v10 = vpop.f32.mrb[16].mxu0 }
 0x10e   :  { %v406_v12 = vadd.f32 %v939_v10, %v1367_v26  ;;  %v400_v13 = vpop.f32.mrb[17].mxu0 }
 0x10f   :  { %v401_v14 = vadd.f32 %v1367_v26, %v400_v13  ;;  %1014 = vmatprep.mubr.f32.mxu1 %v493_v9 }
 0x110   :  { %1015 = vmatmul.mubr.f32.gmra.mrb[8].mxu1 %v494_v11  ;;  %v496_v17 = vmax.f32 %v406_v12, 0.0 }
 0x111   :  { %v495_v15 = vmax.f32 %v401_v14, 0.0  ;;  %v942_v16 = vpop.f32.mrb[18].mxu0 }
 0x112   :  { %v416_v18 = vadd.f32 %v942_v16, %v1367_v26  ;;  %v410_v19 = vpop.f32.mrb[19].mxu0 }
 0x113   :  { %v411_v20 = vadd.f32 %v1367_v26, %v410_v19  ;;  %1017 = vmatprep.mubr.f32.mxu1 %v495_v15 }
 0x114   :  { %1018 = vmatmul.mubr.f32.gmra.mrb[10].mxu1 %v496_v17  ;;  %v498_v23 = vmax.f32 %v416_v18, 0.0 }
 0x115   :  { %v497_v21 = vmax.f32 %v411_v20, 0.0  ;;  %v945_v22 = vpop.f32.mrb[20].mxu0 }
 0x116   :  { %v426_v24 = vadd.f32 %v945_v22, %v1367_v26  ;;  %v420_v25 = vpop.f32.mrb[21].mxu0 }
 0x117   :  { %v421_v27 = vadd.f32 %v1367_v26, %v420_v25  ;;  %1020 = vmatprep.mubr.f32.mxu1 %v497_v21 }
 0x118   :  { %1021 = vmatmul.mubr.f32.gmra.mrb[12].mxu1 %v498_v23  ;;  %v500_v30 = vmax.f32 %v426_v24, 0.0 }
 0x119   :  { %v499_v28 = vmax.f32 %v421_v27, 0.0  ;;  %v948_v29 = vpop.f32.mrb[22].mxu0 }
 0x11a   :  { %v436_v31 = vadd.f32 %v948_v29, %v1367_v26  ;;  %v430_v32 = vpop.f32.mrb[23].mxu0 }
 0x11b   :  { %v431_v33 = vadd.f32 %v1367_v26, %v430_v32  ;;  %1023 = vmatprep.mubr.f32.mxu1 %v499_v28 }
 0x11c   :  { %1024 = vmatmul.mubr.f32.gmra.mrb[14].mxu1 %v500_v30  ;;  %v502_v36 = vmax.f32 %v436_v31, 0.0 }
 0x11d   :  { %v501_v34 = vmax.f32 %v431_v33, 0.0  ;;  %v951_v35 = vpop.f32.mrb[24].mxu0 }
 0x11e   :  { %v446_v37 = vadd.f32 %v951_v35, %v1367_v26  ;;  %v440_v38 = vpop.f32.mrb[25].mxu0 }
 0x11f   :  { %v441_v39 = vadd.f32 %v1367_v26, %v440_v38  ;;  %1026 = vmatprep.mubr.f32.mxu1 %v501_v34 }
 0x120   :  { %1027 = vmatmul.mubr.f32.gmra.mrb[16].mxu1 %v502_v36  ;;  %v504_v42 = vmax.f32 %v446_v37, 0.0 }
 0x121   :  { %v503_v40 = vmax.f32 %v441_v39, 0.0  ;;  %v954_v41 = vpop.f32.mrb[26].mxu0 }
 0x122   :  { %v456_v43 = vadd.f32 %v954_v41, %v1367_v26  ;;  %v450_v44 = vpop.f32.mrb[27].mxu0 }
 0x123   :  { %v451_v45 = vadd.f32 %v1367_v26, %v450_v44  ;;  %1029 = vmatprep.mubr.f32.mxu1 %v503_v40 }
 0x124   :  { %1030 = vmatmul.mubr.f32.gmra.mrb[18].mxu1 %v504_v42  ;;  %v506_v48 = vmax.f32 %v456_v43, 0.0 }
 0x125   :  { %v505_v46 = vmax.f32 %v451_v45, 0.0  ;;  %v957_v47 = vpop.f32.mrb[28].mxu0 }
 0x126   :  { %v466_v49 = vadd.f32 %v957_v47, %v1367_v26  ;;  %v460_v50 = vpop.f32.mrb[29].mxu0 }
 0x127   :  { %v461_v51 = vadd.f32 %v1367_v26, %v460_v50  ;;  %1032 = vmatprep.mubr.f32.mxu1 %v505_v46 }
 0x128   :  { %1033 = vmatmul.mubr.f32.gmra.mrb[20].mxu1 %v506_v48  ;;  %v508_v54 = vmax.f32 %v466_v49, 0.0 }
 0x129   :  { %v507_v52 = vmax.f32 %v461_v51, 0.0  ;;  %v960_v53 = vpop.f32.mrb[30].mxu0 }
 0x12a   :  { %v476_v55 = vadd.f32 %v960_v53, %v1367_v26  ;;  %v470_v56 = vpop.f32.mrb[31].mxu0 }
 0x12b   :  { %v471_v57 = vadd.f32 %v1367_v26, %v470_v56  ;;  %1035 = vmatprep.mubr.f32.mxu1 %v507_v52 }
 0x12c   :  { %1036 = vmatmul.mubr.f32.gmra.mrb[22].mxu1 %v508_v54  ;;  %v510_v59 = vmax.f32 %v476_v55, 0.0 }
 0x12d   :  { %v509_v58 = vmax.f32 %v471_v57, 0.0 }
 0x12f   :  { %1038 = vmatprep.mubr.f32.mxu1 %v509_v58 }
 0x130   :  { %1039 = vmatmul.mubr.f32.gmra.mrb[24].mxu1 %v510_v59 }
 0x1c7   :  { %v995_v61 = vpop.f32.mrb[32].mxu0 }
 0x1c8   :  { %v606_v62 = vadd.f32 %v995_v61, %v1404_v60  ;;  %v600_v63 = vpop.f32.mrb[33].mxu0 }
 0x1c9   :  { %v601_v0 = vadd.f32 %v1404_v60, %v600_v63 }
 0x1ca   :  { %761 = vst.msk [vmem:[%s1571_s5 + $0x8] sm:$0xff] %vm759_vm2, %v606_v62 }
 0x1cb   :  { %760 = vst.msk [vmem:[%s1571_s5] sm:$0xff] %vm759_vm2, %v601_v0  ;;  %v998_v26 = vpop.f32.mrb[34].mxu0 }
 0x1cc   :  { %v616_v1 = vadd.f32 %v998_v26, %v1404_v60  ;;  %v610_v2 = vpop.f32.mrb[35].mxu0 }
 0x1cd   :  { %v611_v3 = vadd.f32 %v1404_v60, %v610_v2 }
 0x1ce   :  { %763 = vst.msk [vmem:[%s1571_s5 + $0x18] sm:$0xff] %vm759_vm2, %v616_v1 }
 0x1cf   :  { %762 = vst.msk [vmem:[%s1571_s5 + $0x10] sm:$0xff] %vm759_vm2, %v611_v3  ;;  %v1001_v4 = vpop.f32.mrb[36].mxu0 }
 0x1d0   :  { %v626_v5 = vadd.f32 %v1001_v4, %v1404_v60  ;;  %v620_v6 = vpop.f32.mrb[37].mxu0 }
 0x1d1   :  { %v621_v7 = vadd.f32 %v1404_v60, %v620_v6 }
 0x1d2   :  { %765 = vst.msk [vmem:[%s1571_s5 + $0x28] sm:$0xff] %vm759_vm2, %v626_v5 }
 0x1d3   :  { %764 = vst.msk [vmem:[%s1571_s5 + $0x20] sm:$0xff] %vm759_vm2, %v621_v7  ;;  %v1004_v8 = vpop.f32.mrb[0].mxu1 }
 0x1d4   :  { %v636_v9 = vadd.f32 %v1004_v8, %v1404_v60  ;;  %v630_v10 = vpop.f32.mrb[1].mxu1 }
 0x1d5   :  { %v631_v11 = vadd.f32 %v1404_v60, %v630_v10 }
 0x1d6   :  { %767 = vst.msk [vmem:[%s1571_s5 + $0x38] sm:$0xff] %vm759_vm2, %v636_v9 }
 0x1d7   :  { %766 = vst.msk [vmem:[%s1571_s5 + $0x30] sm:$0xff] %vm759_vm2, %v631_v11  ;;  %v1007_v12 = vpop.f32.mrb[2].mxu1 }
 0x1d8   :  { %v646_v13 = vadd.f32 %v1007_v12, %v1404_v60  ;;  %v640_v14 = vpop.f32.mrb[3].mxu1 }
 0x1d9   :  { %v641_v15 = vadd.f32 %v1404_v60, %v640_v14 }
 0x1da   :  { %769 = vst.msk [vmem:[%s1571_s5 + $0x48] sm:$0xff] %vm759_vm2, %v646_v13 }
 0x1db   :  { %768 = vst.msk [vmem:[%s1571_s5 + $0x40] sm:$0xff] %vm759_vm2, %v641_v15  ;;  %v1010_v16 = vpop.f32.mrb[4].mxu1 }
 0x1dc   :  { %v656_v17 = vadd.f32 %v1010_v16, %v1404_v60  ;;  %v650_v18 = vpop.f32.mrb[5].mxu1 }
 0x1dd   :  { %v651_v19 = vadd.f32 %v1404_v60, %v650_v18 }
 0x1de   :  { %771 = vst.msk [vmem:[%s1571_s5 + $0x58] sm:$0xff] %vm759_vm2, %v656_v17 }
 0x1df   :  { %770 = vst.msk [vmem:[%s1571_s5 + $0x50] sm:$0xff] %vm759_vm2, %v651_v19  ;;  %v1013_v20 = vpop.f32.mrb[6].mxu1 }
 0x1e0   :  { %v666_v21 = vadd.f32 %v1013_v20, %v1404_v60  ;;  %v660_v22 = vpop.f32.mrb[7].mxu1 }
 0x1e1   :  { %v661_v23 = vadd.f32 %v1404_v60, %v660_v22 }
 0x1e2   :  { %773 = vst.msk [vmem:[%s1571_s5 + $0x68] sm:$0xff] %vm759_vm2, %v666_v21 }
 0x1e3   :  { %772 = vst.msk [vmem:[%s1571_s5 + $0x60] sm:$0xff] %vm759_vm2, %v661_v23  ;;  %v1016_v24 = vpop.f32.mrb[8].mxu1 }
 0x1e4   :  { %v676_v25 = vadd.f32 %v1016_v24, %v1404_v60  ;;  %v670_v27 = vpop.f32.mrb[9].mxu1 }
 0x1e5   :  { %v671_v28 = vadd.f32 %v1404_v60, %v670_v27 }
 0x1e6   :  { %775 = vst.msk [vmem:[%s1571_s5 + $0x78] sm:$0xff] %vm759_vm2, %v676_v25 }
 0x1e7   :  { %774 = vst.msk [vmem:[%s1571_s5 + $0x70] sm:$0xff] %vm759_vm2, %v671_v28  ;;  %v1019_v29 = vpop.f32.mrb[10].mxu1 }
 0x1e8   :  { %v686_v30 = vadd.f32 %v1019_v29, %v1404_v60  ;;  %v680_v31 = vpop.f32.mrb[11].mxu1 }
 0x1e9   :  { %v681_v32 = vadd.f32 %v1404_v60, %v680_v31 }
 0x1ea   :  { %777 = vst.msk [vmem:[%s1571_s5 + $0x88] sm:$0xff] %vm759_vm2, %v686_v30 }
 0x1eb   :  { %776 = vst.msk [vmem:[%s1571_s5 + $0x80] sm:$0xff] %vm759_vm2, %v681_v32  ;;  %v1022_v33 = vpop.f32.mrb[12].mxu1 }
 0x1ec   :  { %v696_v34 = vadd.f32 %v1022_v33, %v1404_v60  ;;  %v690_v35 = vpop.f32.mrb[13].mxu1 }
 0x1ed   :  { %v691_v36 = vadd.f32 %v1404_v60, %v690_v35 }
 0x1ee   :  { %779 = vst.msk [vmem:[%s1571_s5 + $0x98] sm:$0xff] %vm759_vm2, %v696_v34 }
 0x1ef   :  { %778 = vst.msk [vmem:[%s1571_s5 + $0x90] sm:$0xff] %vm759_vm2, %v691_v36  ;;  %v1025_v37 = vpop.f32.mrb[14].mxu1 }
 0x1f0   :  { %v706_v38 = vadd.f32 %v1025_v37, %v1404_v60  ;;  %v700_v39 = vpop.f32.mrb[15].mxu1 }
 0x1f1   :  { %v701_v40 = vadd.f32 %v1404_v60, %v700_v39 }
 0x1f2   :  { %781 = vst.msk [vmem:[%s1571_s5 + $0xa8] sm:$0xff] %vm759_vm2, %v706_v38 }
 0x1f3   :  { %780 = vst.msk [vmem:[%s1571_s5 + $0xa0] sm:$0xff] %vm759_vm2, %v701_v40  ;;  %v1028_v41 = vpop.f32.mrb[16].mxu1 }
 0x1f4   :  { %v716_v42 = vadd.f32 %v1028_v41, %v1404_v60  ;;  %v710_v43 = vpop.f32.mrb[17].mxu1 }
 0x1f5   :  { %v711_v44 = vadd.f32 %v1404_v60, %v710_v43 }
 0x1f6   :  { %783 = vst.msk [vmem:[%s1571_s5 + $0xb8] sm:$0xff] %vm759_vm2, %v716_v42 }
 0x1f7   :  { %782 = vst.msk [vmem:[%s1571_s5 + $0xb0] sm:$0xff] %vm759_vm2, %v711_v44  ;;  %v1031_v45 = vpop.f32.mrb[18].mxu1 }
 0x1f8   :  { %v726_v46 = vadd.f32 %v1031_v45, %v1404_v60  ;;  %v720_v47 = vpop.f32.mrb[19].mxu1 }
 0x1f9   :  { %v721_v48 = vadd.f32 %v1404_v60, %v720_v47 }
 0x1fa   :  { %785 = vst.msk [vmem:[%s1571_s5 + $0xc8] sm:$0xff] %vm759_vm2, %v726_v46 }
 0x1fb   :  { %784 = vst.msk [vmem:[%s1571_s5 + $0xc0] sm:$0xff] %vm759_vm2, %v721_v48  ;;  %v1034_v49 = vpop.f32.mrb[20].mxu1 }
 0x1fc   :  { %v736_v50 = vadd.f32 %v1034_v49, %v1404_v60  ;;  %v730_v51 = vpop.f32.mrb[21].mxu1 }
 0x1fd   :  { %v731_v52 = vadd.f32 %v1404_v60, %v730_v51 }
 0x1fe   :  { %787 = vst.msk [vmem:[%s1571_s5 + $0xd8] sm:$0xff] %vm759_vm2, %v736_v50 }
 0x1ff   :  { %786 = vst.msk [vmem:[%s1571_s5 + $0xd0] sm:$0xff] %vm759_vm2, %v731_v52  ;;  %v1037_v53 = vpop.f32.mrb[22].mxu1 }
 0x200   :  { %v746_v54 = vadd.f32 %v1037_v53, %v1404_v60  ;;  %v740_v55 = vpop.f32.mrb[23].mxu1 }
 0x201   :  { %v741_v56 = vadd.f32 %v1404_v60, %v740_v55 }
 0x202   :  { %789 = vst.msk [vmem:[%s1571_s5 + $0xe8] sm:$0xff] %vm759_vm2, %v746_v54 }
 0x203   :  { %788 = vst.msk [vmem:[%s1571_s5 + $0xe0] sm:$0xff] %vm759_vm2, %v741_v56  ;;  %v1040_v57 = vpop.f32.mrb[24].mxu1 }
 0x204   :  { %v756_v58 = vadd.f32 %v1040_v57, %v1404_v60  ;;  %v750_v59 = vpop.f32.mrb[25].mxu1 }
 0x205   :  { %v751_v61 = vadd.f32 %v1404_v60, %v750_v59 }
 0x206   :  { %791 = vst.msk [vmem:[%s1571_s5 + $0xf8] sm:$0xff] %vm759_vm2, %v756_v58 }
 0x207   :  { %790 = vst.msk [vmem:[%s1571_s5 + $0xf0] sm:$0xff] %vm759_vm2, %v751_v61 }

</bundles_post_ra>
